<compile_context>
chip_gen: v7x
topology: tpu7x:2x2x1
jax: 0.10.0
libtpu: 0.0.40
codegen_flags: <defaults>
</compile_context>

<pallas_src>
import jax
import jax.numpy as jnp
from jax.experimental import pallas as pl
from jax.experimental.pallas import tpu as pltpu

CIN = 3
COUT = 15

_MAX_LANE_TILE = 65536                  # cap on lanes per grid step
_VMEM_BLOCK_BUDGET = 12 * 1024 * 1024   # per-buffer budget (x2 for double buffering)


def conv1x1_relu_kernel(w_ref, b_ref, x_ref, o_ref):
    """w_ref: SMEM (15, 3) f32, b_ref: SMEM (15,) f32,
       x_ref: VMEM (3, Hb, Ta) f32, o_ref: VMEM (15, Hb, Ta) f32."""
    x0 = x_ref[0]          # (Hb, Ta)
    x1 = x_ref[1]
    x2 = x_ref[2]
    # 15 independent (Hb, Ta) output slabs: 3 muls + 3 adds + 1 max each (VPU),
    # lane-dense unmasked stores; completely hidden under the HBM DMA.
    for o in range(COUT):
        y = (w_ref[o, 0] * x0 + w_ref[o, 1] * x1 + w_ref[o, 2] * x2) + b_ref[o]
        o_ref[o] = jnp.maximum(y, 0.0)


def _pick_lane_tile(a_len, hb):
    """Lane tile over the A axis: big enough to amortize the ~0.35us per-step
    overhead, small enough for double-buffered VMEM, and >=2 grid steps when
    possible so both v7x TensorCores get work."""
    if a_len < 256:
        return a_len                            # tiny input: one full block
    hb_pad = ((hb + 7) // 8) * 8                # sublane padding of VMEM tiles
    ta = _VMEM_BLOCK_BUDGET // ((CIN + COUT) * hb_pad * 4)
    half = ((pl.cdiv(a_len, 2) + 127) // 128) * 128   # force >= 2 grid steps
    ta = min(_MAX_LANE_TILE, ta, half)
    ta = max(128, (ta // 128) * 128)
    return ta


def conv1x1_relu_final(w2, b1, x4):
    """x4: (3, Hb, A) f32 with x4[c, b, a] = input pixel P = a*Hb + b, channel c.
    Returns (15, Hb, A) f32 == the module's final output up to a free reshape."""
    _, hb, a_len = x4.shape
    ta = _pick_lane_tile(a_len, hb)
    grid = (pl.cdiv(a_len, ta),)
    m = hb * a_len
    return pl.pallas_call(
        conv1x1_relu_kernel,
        out_shape=jax.ShapeDtypeStruct((COUT, hb, a_len), jnp.float32),
        grid_spec=pltpu.PrefetchScalarGridSpec(
            num_scalar_prefetch=0,
            grid=grid,
            in_specs=[
                pl.BlockSpec(memory_space=pltpu.MemorySpace.SMEM),   # w (15, 3)
                pl.BlockSpec(memory_space=pltpu.MemorySpace.SMEM),   # b (15,)
                pl.BlockSpec((CIN, hb, ta), lambda j: (0, 0, j)),
            ],
            out_specs=pl.BlockSpec((COUT, hb, ta), lambda j: (0, 0, j)),
        ),
        compiler_params=pltpu.CompilerParams(
            dimension_semantics=("parallel",),
            vmem_limit_bytes=32 * 1024 * 1024,
        ),
        cost_estimate=pl.CostEstimate(
            flops=2 * CIN * COUT * m,
            transcendentals=0,
            bytes_accessed=4 * (CIN + COUT) * m,
        ),
    )(w2, b1, x4)


def model_forward(x_nchw, w_oihw, bias):
    """Reproduces Model.forward for x: (N, 3, H, W) float32."""
    n, c, h, w = x_nchw.shape
    assert c == CIN
    assert h % 8 == 0  # required by the torch reshape (post-permute dim0 // 8)
    hb = h // 8
    a_len = 8 * w * n
    m = h * w * n

    w2 = w_oihw.reshape(COUT, CIN).astype(jnp.float32)
    b1 = bias.reshape(COUT).astype(jnp.float32)

    # Pre-permute ONLY the 3-channel input into the layout the final output
    # needs: X4[c, b, a] = x[n, c, h, w] with (h*W + w)*N + n == a*Hb + b.
    # This is the cheap side (~12*M bytes); the 5x-larger output never takes a
    # post-kernel round trip through HBM.
    x4 = jnp.transpose(x_nchw, (1, 2, 3, 0)).reshape(CIN, a_len, hb)
    x4 = jnp.transpose(x4, (0, 2, 1))              # (3, Hb, A)

    y = conv1x1_relu_final(w2, b1, x4)             # (15, Hb, A): final layout
    return y.reshape(1, 1, COUT * m)               # free reshape


if __name__ == "__main__":
    key = jax.random.PRNGKey(0)
    kx, kw, kb = jax.random.split(key, 3)

    N, C, H, W = 2, 3, 16, 16
    x = jax.random.normal(kx, (N, C, H, W), dtype=jnp.float32)

    # Deterministic parameters for Conv2d(3, 15, kernel_size=1)
    w = jax.random.normal(kw, (COUT, CIN, 1, 1), dtype=jnp.float32) * 0.1
    b = jax.random.normal(kb, (COUT,), dtype=jnp.float32) * 0.1

    fwd = jax.jit(model_forward)
    out = fwd(x, w, b)
    jax.block_until_ready(out)

    # pure-JAX reference mirroring the torch module op by op
    ref = jnp.einsum("nchw,oc->nohw", x, w.reshape(COUT, CIN)) + b[None, :, None, None]
    r = jnp.transpose(ref, (2, 3, 0, 1))            # (H, W, N, 15)
    r = r.reshape(-1, H // 8, 1, 3, 5)
    r = jnp.swapaxes(r, 0, 1)
    r = r.reshape(-1, 1, 15)[..., None]
    r = jnp.transpose(r, (1, 2, 0, 3)).reshape(1, -1)[None]
    r = jnp.maximum(r, 0.0)

    assert out.shape == (1, 1, COUT * N * H * W), out.shape
    assert jnp.allclose(out, r, atol=1e-5, rtol=1e-5), float(jnp.max(jnp.abs(out - r)))

    print("KERNEL_OK")
</pallas_src>

<mosaic_0001>
module attributes {stable_mosaic.version = 11 : i64} {
  func.func @conv1x1_relu_kernel(%arg0: i32, %arg1: memref<15x3xf32, #tpu.memory_space<smem>>, %arg2: memref<15xf32, #tpu.memory_space<smem>>, %arg3: memref<3x2x128xf32, #tpu.memory_space<vmem>>, %arg4: memref<15x2x128xf32, #tpu.memory_space<vmem>>) attributes {dimension_semantics = [#tpu.dimension_semantics<parallel>], iteration_bounds = array<i64: 2>, scalar_prefetch = 0 : i64, scratch_operands = 0 : i64, tpu.core_type = #tpu.core_type<tc>, window_params = [{transform_indices = @transform_0, window_bounds = array<i64: 15, 3>}, {transform_indices = @transform_1, window_bounds = array<i64: 15>}, {transform_indices = @transform_2, window_bounds = array<i64: 3, 2, 128>}, {transform_indices = @transform_3, window_bounds = array<i64: 15, 2, 128>}]} {
    %c0 = arith.constant 0 : index
    %c0_0 = arith.constant 0 : index
    %c0_1 = arith.constant 0 : index
    %0 = vector.load %arg3[%c0, %c0_0, %c0_1] : memref<3x2x128xf32, #tpu.memory_space<vmem>>, vector<1x2x128xf32>
    %1 = vector.shape_cast %0 : vector<1x2x128xf32> to vector<2x128xf32>
    %c1 = arith.constant 1 : index
    %c0_2 = arith.constant 0 : index
    %c0_3 = arith.constant 0 : index
    %2 = vector.load %arg3[%c1, %c0_2, %c0_3] : memref<3x2x128xf32, #tpu.memory_space<vmem>>, vector<1x2x128xf32>
    %3 = vector.shape_cast %2 : vector<1x2x128xf32> to vector<2x128xf32>
    %c2 = arith.constant 2 : index
    %c0_4 = arith.constant 0 : index
    %c0_5 = arith.constant 0 : index
    %4 = vector.load %arg3[%c2, %c0_4, %c0_5] : memref<3x2x128xf32, #tpu.memory_space<vmem>>, vector<1x2x128xf32>
    %5 = vector.shape_cast %4 : vector<1x2x128xf32> to vector<2x128xf32>
    %c0_6 = arith.constant 0 : index
    %c0_7 = arith.constant 0 : index
    %6 = memref.load %arg1[%c0_6, %c0_7] : memref<15x3xf32, #tpu.memory_space<smem>>
    %7 = vector.broadcast %6 : f32 to vector<2x128xf32>
    %8 = arith.mulf %7, %1 : vector<2x128xf32>
    %c0_8 = arith.constant 0 : index
    %c1_9 = arith.constant 1 : index
    %9 = memref.load %arg1[%c0_8, %c1_9] : memref<15x3xf32, #tpu.memory_space<smem>>
    %10 = vector.broadcast %9 : f32 to vector<2x128xf32>
    %11 = arith.mulf %10, %3 : vector<2x128xf32>
    %12 = arith.addf %8, %11 : vector<2x128xf32>
    %c0_10 = arith.constant 0 : index
    %c2_11 = arith.constant 2 : index
    %13 = memref.load %arg1[%c0_10, %c2_11] : memref<15x3xf32, #tpu.memory_space<smem>>
    %14 = vector.broadcast %13 : f32 to vector<2x128xf32>
    %15 = arith.mulf %14, %5 : vector<2x128xf32>
    %16 = arith.addf %12, %15 : vector<2x128xf32>
    %c0_12 = arith.constant 0 : index
    %17 = memref.load %arg2[%c0_12] : memref<15xf32, #tpu.memory_space<smem>>
    %18 = vector.broadcast %17 : f32 to vector<2x128xf32>
    %19 = arith.addf %16, %18 : vector<2x128xf32>
    %cst = arith.constant 0.000000e+00 : f32
    %20 = vector.broadcast %cst : f32 to vector<2x128xf32>
    %21 = arith.maximumf %19, %20 : vector<2x128xf32>
    %c0_13 = arith.constant 0 : index
    %c0_14 = arith.constant 0 : index
    %c0_15 = arith.constant 0 : index
    %22 = vector.load %arg4[%c0_13, %c0_14, %c0_15] : memref<15x2x128xf32, #tpu.memory_space<vmem>>, vector<1x2x128xf32>
    %23 = vector.shape_cast %22 : vector<1x2x128xf32> to vector<2x128xf32>
    %24 = vector.shape_cast %21 : vector<2x128xf32> to vector<1x2x128xf32>
    tpu.vector_store %arg4[%c0_13, %c0_14, %c0_15], %24 {strides = array<i32>} : memref<15x2x128xf32, #tpu.memory_space<vmem>>, vector<1x2x128xf32>,
    %c1_16 = arith.constant 1 : index
    %c0_17 = arith.constant 0 : index
    %25 = memref.load %arg1[%c1_16, %c0_17] : memref<15x3xf32, #tpu.memory_space<smem>>
    %26 = vector.broadcast %25 : f32 to vector<2x128xf32>
    %27 = arith.mulf %26, %1 : vector<2x128xf32>
    %c1_18 = arith.constant 1 : index
    %c1_19 = arith.constant 1 : index
    %28 = memref.load %arg1[%c1_18, %c1_19] : memref<15x3xf32, #tpu.memory_space<smem>>
    %29 = vector.broadcast %28 : f32 to vector<2x128xf32>
    %30 = arith.mulf %29, %3 : vector<2x128xf32>
    %31 = arith.addf %27, %30 : vector<2x128xf32>
    %c1_20 = arith.constant 1 : index
    %c2_21 = arith.constant 2 : index
    %32 = memref.load %arg1[%c1_20, %c2_21] : memref<15x3xf32, #tpu.memory_space<smem>>
    %33 = vector.broadcast %32 : f32 to vector<2x128xf32>
    %34 = arith.mulf %33, %5 : vector<2x128xf32>
    %35 = arith.addf %31, %34 : vector<2x128xf32>
    %c1_22 = arith.constant 1 : index
    %36 = memref.load %arg2[%c1_22] : memref<15xf32, #tpu.memory_space<smem>>
    %37 = vector.broadcast %36 : f32 to vector<2x128xf32>
    %38 = arith.addf %35, %37 : vector<2x128xf32>
    %cst_23 = arith.constant 0.000000e+00 : f32
    %39 = vector.broadcast %cst_23 : f32 to vector<2x128xf32>
    %40 = arith.maximumf %38, %39 : vector<2x128xf32>
    %c1_24 = arith.constant 1 : index
    %c0_25 = arith.constant 0 : index
    %c0_26 = arith.constant 0 : index
    %41 = vector.load %arg4[%c1_24, %c0_25, %c0_26] : memref<15x2x128xf32, #tpu.memory_space<vmem>>, vector<1x2x128xf32>
    %42 = vector.shape_cast %41 : vector<1x2x128xf32> to vector<2x128xf32>
    %43 = vector.shape_cast %40 : vector<2x128xf32> to vector<1x2x128xf32>
    tpu.vector_store %arg4[%c1_24, %c0_25, %c0_26], %43 {strides = array<i32>} : memref<15x2x128xf32, #tpu.memory_space<vmem>>, vector<1x2x128xf32>,
    %c2_27 = arith.constant 2 : index
    %c0_28 = arith.constant 0 : index
    %44 = memref.load %arg1[%c2_27, %c0_28] : memref<15x3xf32, #tpu.memory_space<smem>>
    %45 = vector.broadcast %44 : f32 to vector<2x128xf32>
    %46 = arith.mulf %45, %1 : vector<2x128xf32>
    %c2_29 = arith.constant 2 : index
    %c1_30 = arith.constant 1 : index
    %47 = memref.load %arg1[%c2_29, %c1_30] : memref<15x3xf32, #tpu.memory_space<smem>>
    %48 = vector.broadcast %47 : f32 to vector<2x128xf32>
    %49 = arith.mulf %48, %3 : vector<2x128xf32>
    %50 = arith.addf %46, %49 : vector<2x128xf32>
    %c2_31 = arith.constant 2 : index
    %c2_32 = arith.constant 2 : index
    %51 = memref.load %arg1[%c2_31, %c2_32] : memref<15x3xf32, #tpu.memory_space<smem>>
    %52 = vector.broadcast %51 : f32 to vector<2x128xf32>
    %53 = arith.mulf %52, %5 : vector<2x128xf32>
    %54 = arith.addf %50, %53 : vector<2x128xf32>
    %c2_33 = arith.constant 2 : index
    %55 = memref.load %arg2[%c2_33] : memref<15xf32, #tpu.memory_space<smem>>
    %56 = vector.broadcast %55 : f32 to vector<2x128xf32>
    %57 = arith.addf %54, %56 : vector<2x128xf32>
    %cst_34 = arith.constant 0.000000e+00 : f32
    %58 = vector.broadcast %cst_34 : f32 to vector<2x128xf32>
    %59 = arith.maximumf %57, %58 : vector<2x128xf32>
    %c2_35 = arith.constant 2 : index
    %c0_36 = arith.constant 0 : index
    %c0_37 = arith.constant 0 : index
    %60 = vector.load %arg4[%c2_35, %c0_36, %c0_37] : memref<15x2x128xf32, #tpu.memory_space<vmem>>, vector<1x2x128xf32>
    %61 = vector.shape_cast %60 : vector<1x2x128xf32> to vector<2x128xf32>
    %62 = vector.shape_cast %59 : vector<2x128xf32> to vector<1x2x128xf32>
    tpu.vector_store %arg4[%c2_35, %c0_36, %c0_37], %62 {strides = array<i32>} : memref<15x2x128xf32, #tpu.memory_space<vmem>>, vector<1x2x128xf32>,
    %c3 = arith.constant 3 : index
    %c0_38 = arith.constant 0 : index
    %63 = memref.load %arg1[%c3, %c0_38] : memref<15x3xf32, #tpu.memory_space<smem>>
    %64 = vector.broadcast %63 : f32 to vector<2x128xf32>
    %65 = arith.mulf %64, %1 : vector<2x128xf32>
    %c3_39 = arith.constant 3 : index
    %c1_40 = arith.constant 1 : index
    %66 = memref.load %arg1[%c3_39, %c1_40] : memref<15x3xf32, #tpu.memory_space<smem>>
    %67 = vector.broadcast %66 : f32 to vector<2x128xf32>
    %68 = arith.mulf %67, %3 : vector<2x128xf32>
    %69 = arith.addf %65, %68 : vector<2x128xf32>
    %c3_41 = arith.constant 3 : index
    %c2_42 = arith.constant 2 : index
    %70 = memref.load %arg1[%c3_41, %c2_42] : memref<15x3xf32, #tpu.memory_space<smem>>
    %71 = vector.broadcast %70 : f32 to vector<2x128xf32>
    %72 = arith.mulf %71, %5 : vector<2x128xf32>
    %73 = arith.addf %69, %72 : vector<2x128xf32>
    %c3_43 = arith.constant 3 : index
    %74 = memref.load %arg2[%c3_43] : memref<15xf32, #tpu.memory_space<smem>>
    %75 = vector.broadcast %74 : f32 to vector<2x128xf32>
    %76 = arith.addf %73, %75 : vector<2x128xf32>
    %cst_44 = arith.constant 0.000000e+00 : f32
    %77 = vector.broadcast %cst_44 : f32 to vector<2x128xf32>
    %78 = arith.maximumf %76, %77 : vector<2x128xf32>
    %c3_45 = arith.constant 3 : index
    %c0_46 = arith.constant 0 : index
    %c0_47 = arith.constant 0 : index
    %79 = vector.load %arg4[%c3_45, %c0_46, %c0_47] : memref<15x2x128xf32, #tpu.memory_space<vmem>>, vector<1x2x128xf32>
    %80 = vector.shape_cast %79 : vector<1x2x128xf32> to vector<2x128xf32>
    %81 = vector.shape_cast %78 : vector<2x128xf32> to vector<1x2x128xf32>
    tpu.vector_store %arg4[%c3_45, %c0_46, %c0_47], %81 {strides = array<i32>} : memref<15x2x128xf32, #tpu.memory_space<vmem>>, vector<1x2x128xf32>,
    %c4 = arith.constant 4 : index
    %c0_48 = arith.constant 0 : index
    %82 = memref.load %arg1[%c4, %c0_48] : memref<15x3xf32, #tpu.memory_space<smem>>
    %83 = vector.broadcast %82 : f32 to vector<2x128xf32>
    %84 = arith.mulf %83, %1 : vector<2x128xf32>
    %c4_49 = arith.constant 4 : index
    %c1_50 = arith.constant 1 : index
    %85 = memref.load %arg1[%c4_49, %c1_50] : memref<15x3xf32, #tpu.memory_space<smem>>
    %86 = vector.broadcast %85 : f32 to vector<2x128xf32>
    %87 = arith.mulf %86, %3 : vector<2x128xf32>
    %88 = arith.addf %84, %87 : vector<2x128xf32>
    %c4_51 = arith.constant 4 : index
    %c2_52 = arith.constant 2 : index
    %89 = memref.load %arg1[%c4_51, %c2_52] : memref<15x3xf32, #tpu.memory_space<smem>>
    %90 = vector.broadcast %89 : f32 to vector<2x128xf32>
    %91 = arith.mulf %90, %5 : vector<2x128xf32>
    %92 = arith.addf %88, %91 : vector<2x128xf32>
    %c4_53 = arith.constant 4 : index
    %93 = memref.load %arg2[%c4_53] : memref<15xf32, #tpu.memory_space<smem>>
    %94 = vector.broadcast %93 : f32 to vector<2x128xf32>
    %95 = arith.addf %92, %94 : vector<2x128xf32>
    %cst_54 = arith.constant 0.000000e+00 : f32
    %96 = vector.broadcast %cst_54 : f32 to vector<2x128xf32>
    %97 = arith.maximumf %95, %96 : vector<2x128xf32>
    %c4_55 = arith.constant 4 : index
    %c0_56 = arith.constant 0 : index
    %c0_57 = arith.constant 0 : index
    %98 = vector.load %arg4[%c4_55, %c0_56, %c0_57] : memref<15x2x128xf32, #tpu.memory_space<vmem>>, vector<1x2x128xf32>
    %99 = vector.shape_cast %98 : vector<1x2x128xf32> to vector<2x128xf32>
    %100 = vector.shape_cast %97 : vector<2x128xf32> to vector<1x2x128xf32>
    tpu.vector_store %arg4[%c4_55, %c0_56, %c0_57], %100 {strides = array<i32>} : memref<15x2x128xf32, #tpu.memory_space<vmem>>, vector<1x2x128xf32>,
    %c5 = arith.constant 5 : index
    %c0_58 = arith.constant 0 : index
    %101 = memref.load %arg1[%c5, %c0_58] : memref<15x3xf32, #tpu.memory_space<smem>>
    %102 = vector.broadcast %101 : f32 to vector<2x128xf32>
    %103 = arith.mulf %102, %1 : vector<2x128xf32>
    %c5_59 = arith.constant 5 : index
    %c1_60 = arith.constant 1 : index
    %104 = memref.load %arg1[%c5_59, %c1_60] : memref<15x3xf32, #tpu.memory_space<smem>>
    %105 = vector.broadcast %104 : f32 to vector<2x128xf32>
    %106 = arith.mulf %105, %3 : vector<2x128xf32>
    %107 = arith.addf %103, %106 : vector<2x128xf32>
    %c5_61 = arith.constant 5 : index
    %c2_62 = arith.constant 2 : index
    %108 = memref.load %arg1[%c5_61, %c2_62] : memref<15x3xf32, #tpu.memory_space<smem>>
    %109 = vector.broadcast %108 : f32 to vector<2x128xf32>
    %110 = arith.mulf %109, %5 : vector<2x128xf32>
    %111 = arith.addf %107, %110 : vector<2x128xf32>
    %c5_63 = arith.constant 5 : index
    %112 = memref.load %arg2[%c5_63] : memref<15xf32, #tpu.memory_space<smem>>
    %113 = vector.broadcast %112 : f32 to vector<2x128xf32>
    %114 = arith.addf %111, %113 : vector<2x128xf32>
    %cst_64 = arith.constant 0.000000e+00 : f32
    %115 = vector.broadcast %cst_64 : f32 to vector<2x128xf32>
    %116 = arith.maximumf %114, %115 : vector<2x128xf32>
    %c5_65 = arith.constant 5 : index
    %c0_66 = arith.constant 0 : index
    %c0_67 = arith.constant 0 : index
    %117 = vector.load %arg4[%c5_65, %c0_66, %c0_67] : memref<15x2x128xf32, #tpu.memory_space<vmem>>, vector<1x2x128xf32>
    %118 = vector.shape_cast %117 : vector<1x2x128xf32> to vector<2x128xf32>
    %119 = vector.shape_cast %116 : vector<2x128xf32> to vector<1x2x128xf32>
    tpu.vector_store %arg4[%c5_65, %c0_66, %c0_67], %119 {strides = array<i32>} : memref<15x2x128xf32, #tpu.memory_space<vmem>>, vector<1x2x128xf32>,
    %c6 = arith.constant 6 : index
    %c0_68 = arith.constant 0 : index
    %120 = memref.load %arg1[%c6, %c0_68] : memref<15x3xf32, #tpu.memory_space<smem>>
    %121 = vector.broadcast %120 : f32 to vector<2x128xf32>
    %122 = arith.mulf %121, %1 : vector<2x128xf32>
    %c6_69 = arith.constant 6 : index
    %c1_70 = arith.constant 1 : index
    %123 = memref.load %arg1[%c6_69, %c1_70] : memref<15x3xf32, #tpu.memory_space<smem>>
    %124 = vector.broadcast %123 : f32 to vector<2x128xf32>
    %125 = arith.mulf %124, %3 : vector<2x128xf32>
    %126 = arith.addf %122, %125 : vector<2x128xf32>
    %c6_71 = arith.constant 6 : index
    %c2_72 = arith.constant 2 : index
    %127 = memref.load %arg1[%c6_71, %c2_72] : memref<15x3xf32, #tpu.memory_space<smem>>
    %128 = vector.broadcast %127 : f32 to vector<2x128xf32>
    %129 = arith.mulf %128, %5 : vector<2x128xf32>
    %130 = arith.addf %126, %129 : vector<2x128xf32>
    %c6_73 = arith.constant 6 : index
    %131 = memref.load %arg2[%c6_73] : memref<15xf32, #tpu.memory_space<smem>>
    %132 = vector.broadcast %131 : f32 to vector<2x128xf32>
    %133 = arith.addf %130, %132 : vector<2x128xf32>
    %cst_74 = arith.constant 0.000000e+00 : f32
    %134 = vector.broadcast %cst_74 : f32 to vector<2x128xf32>
    %135 = arith.maximumf %133, %134 : vector<2x128xf32>
    %c6_75 = arith.constant 6 : index
    %c0_76 = arith.constant 0 : index
    %c0_77 = arith.constant 0 : index
    %136 = vector.load %arg4[%c6_75, %c0_76, %c0_77] : memref<15x2x128xf32, #tpu.memory_space<vmem>>, vector<1x2x128xf32>
    %137 = vector.shape_cast %136 : vector<1x2x128xf32> to vector<2x128xf32>
    %138 = vector.shape_cast %135 : vector<2x128xf32> to vector<1x2x128xf32>
    tpu.vector_store %arg4[%c6_75, %c0_76, %c0_77], %138 {strides = array<i32>} : memref<15x2x128xf32, #tpu.memory_space<vmem>>, vector<1x2x128xf32>,
    %c7 = arith.constant 7 : index
    %c0_78 = arith.constant 0 : index
    %139 = memref.load %arg1[%c7, %c0_78] : memref<15x3xf32, #tpu.memory_space<smem>>
    %140 = vector.broadcast %139 : f32 to vector<2x128xf32>
    %141 = arith.mulf %140, %1 : vector<2x128xf32>
    %c7_79 = arith.constant 7 : index
    %c1_80 = arith.constant 1 : index
    %142 = memref.load %arg1[%c7_79, %c1_80] : memref<15x3xf32, #tpu.memory_space<smem>>
    %143 = vector.broadcast %142 : f32 to vector<2x128xf32>
    %144 = arith.mulf %143, %3 : vector<2x128xf32>
    %145 = arith.addf %141, %144 : vector<2x128xf32>
    %c7_81 = arith.constant 7 : index
    %c2_82 = arith.constant 2 : index
    %146 = memref.load %arg1[%c7_81, %c2_82] : memref<15x3xf32, #tpu.memory_space<smem>>
    %147 = vector.broadcast %146 : f32 to vector<2x128xf32>
    %148 = arith.mulf %147, %5 : vector<2x128xf32>
    %149 = arith.addf %145, %148 : vector<2x128xf32>
    %c7_83 = arith.constant 7 : index
    %150 = memref.load %arg2[%c7_83] : memref<15xf32, #tpu.memory_space<smem>>
    %151 = vector.broadcast %150 : f32 to vector<2x128xf32>
    %152 = arith.addf %149, %151 : vector<2x128xf32>
    %cst_84 = arith.constant 0.000000e+00 : f32
    %153 = vector.broadcast %cst_84 : f32 to vector<2x128xf32>
    %154 = arith.maximumf %152, %153 : vector<2x128xf32>
    %c7_85 = arith.constant 7 : index
    %c0_86 = arith.constant 0 : index
    %c0_87 = arith.constant 0 : index
    %155 = vector.load %arg4[%c7_85, %c0_86, %c0_87] : memref<15x2x128xf32, #tpu.memory_space<vmem>>, vector<1x2x128xf32>
    %156 = vector.shape_cast %155 : vector<1x2x128xf32> to vector<2x128xf32>
    %157 = vector.shape_cast %154 : vector<2x128xf32> to vector<1x2x128xf32>
    tpu.vector_store %arg4[%c7_85, %c0_86, %c0_87], %157 {strides = array<i32>} : memref<15x2x128xf32, #tpu.memory_space<vmem>>, vector<1x2x128xf32>,
    %c8 = arith.constant 8 : index
    %c0_88 = arith.constant 0 : index
    %158 = memref.load %arg1[%c8, %c0_88] : memref<15x3xf32, #tpu.memory_space<smem>>
    %159 = vector.broadcast %158 : f32 to vector<2x128xf32>
    %160 = arith.mulf %159, %1 : vector<2x128xf32>
    %c8_89 = arith.constant 8 : index
    %c1_90 = arith.constant 1 : index
    %161 = memref.load %arg1[%c8_89, %c1_90] : memref<15x3xf32, #tpu.memory_space<smem>>
    %162 = vector.broadcast %161 : f32 to vector<2x128xf32>
    %163 = arith.mulf %162, %3 : vector<2x128xf32>
    %164 = arith.addf %160, %163 : vector<2x128xf32>
    %c8_91 = arith.constant 8 : index
    %c2_92 = arith.constant 2 : index
    %165 = memref.load %arg1[%c8_91, %c2_92] : memref<15x3xf32, #tpu.memory_space<smem>>
    %166 = vector.broadcast %165 : f32 to vector<2x128xf32>
    %167 = arith.mulf %166, %5 : vector<2x128xf32>
    %168 = arith.addf %164, %167 : vector<2x128xf32>
    %c8_93 = arith.constant 8 : index
    %169 = memref.load %arg2[%c8_93] : memref<15xf32, #tpu.memory_space<smem>>
    %170 = vector.broadcast %169 : f32 to vector<2x128xf32>
    %171 = arith.addf %168, %170 : vector<2x128xf32>
    %cst_94 = arith.constant 0.000000e+00 : f32
    %172 = vector.broadcast %cst_94 : f32 to vector<2x128xf32>
    %173 = arith.maximumf %171, %172 : vector<2x128xf32>
    %c8_95 = arith.constant 8 : index
    %c0_96 = arith.constant 0 : index
    %c0_97 = arith.constant 0 : index
    %174 = vector.load %arg4[%c8_95, %c0_96, %c0_97] : memref<15x2x128xf32, #tpu.memory_space<vmem>>, vector<1x2x128xf32>
    %175 = vector.shape_cast %174 : vector<1x2x128xf32> to vector<2x128xf32>
    %176 = vector.shape_cast %173 : vector<2x128xf32> to vector<1x2x128xf32>
    tpu.vector_store %arg4[%c8_95, %c0_96, %c0_97], %176 {strides = array<i32>} : memref<15x2x128xf32, #tpu.memory_space<vmem>>, vector<1x2x128xf32>,
    %c9 = arith.constant 9 : index
    %c0_98 = arith.constant 0 : index
    %177 = memref.load %arg1[%c9, %c0_98] : memref<15x3xf32, #tpu.memory_space<smem>>
    %178 = vector.broadcast %177 : f32 to vector<2x128xf32>
    %179 = arith.mulf %178, %1 : vector<2x128xf32>
    %c9_99 = arith.constant 9 : index
    %c1_100 = arith.constant 1 : index
    %180 = memref.load %arg1[%c9_99, %c1_100] : memref<15x3xf32, #tpu.memory_space<smem>>
    %181 = vector.broadcast %180 : f32 to vector<2x128xf32>
    %182 = arith.mulf %181, %3 : vector<2x128xf32>
    %183 = arith.addf %179, %182 : vector<2x128xf32>
    %c9_101 = arith.constant 9 : index
    %c2_102 = arith.constant 2 : index
    %184 = memref.load %arg1[%c9_101, %c2_102] : memref<15x3xf32, #tpu.memory_space<smem>>
    %185 = vector.broadcast %184 : f32 to vector<2x128xf32>
    %186 = arith.mulf %185, %5 : vector<2x128xf32>
    %187 = arith.addf %183, %186 : vector<2x128xf32>
    %c9_103 = arith.constant 9 : index
    %188 = memref.load %arg2[%c9_103] : memref<15xf32, #tpu.memory_space<smem>>
    %189 = vector.broadcast %188 : f32 to vector<2x128xf32>
    %190 = arith.addf %187, %189 : vector<2x128xf32>
    %cst_104 = arith.constant 0.000000e+00 : f32
    %191 = vector.broadcast %cst_104 : f32 to vector<2x128xf32>
    %192 = arith.maximumf %190, %191 : vector<2x128xf32>
    %c9_105 = arith.constant 9 : index
    %c0_106 = arith.constant 0 : index
    %c0_107 = arith.constant 0 : index
    %193 = vector.load %arg4[%c9_105, %c0_106, %c0_107] : memref<15x2x128xf32, #tpu.memory_space<vmem>>, vector<1x2x128xf32>
    %194 = vector.shape_cast %193 : vector<1x2x128xf32> to vector<2x128xf32>
    %195 = vector.shape_cast %192 : vector<2x128xf32> to vector<1x2x128xf32>
    tpu.vector_store %arg4[%c9_105, %c0_106, %c0_107], %195 {strides = array<i32>} : memref<15x2x128xf32, #tpu.memory_space<vmem>>, vector<1x2x128xf32>,
    %c10 = arith.constant 10 : index
    %c0_108 = arith.constant 0 : index
    %196 = memref.load %arg1[%c10, %c0_108] : memref<15x3xf32, #tpu.memory_space<smem>>
    %197 = vector.broadcast %196 : f32 to vector<2x128xf32>
    %198 = arith.mulf %197, %1 : vector<2x128xf32>
    %c10_109 = arith.constant 10 : index
    %c1_110 = arith.constant 1 : index
    %199 = memref.load %arg1[%c10_109, %c1_110] : memref<15x3xf32, #tpu.memory_space<smem>>
    %200 = vector.broadcast %199 : f32 to vector<2x128xf32>
    %201 = arith.mulf %200, %3 : vector<2x128xf32>
    %202 = arith.addf %198, %201 : vector<2x128xf32>
    %c10_111 = arith.constant 10 : index
    %c2_112 = arith.constant 2 : index
    %203 = memref.load %arg1[%c10_111, %c2_112] : memref<15x3xf32, #tpu.memory_space<smem>>
    %204 = vector.broadcast %203 : f32 to vector<2x128xf32>
    %205 = arith.mulf %204, %5 : vector<2x128xf32>
    %206 = arith.addf %202, %205 : vector<2x128xf32>
    %c10_113 = arith.constant 10 : index
    %207 = memref.load %arg2[%c10_113] : memref<15xf32, #tpu.memory_space<smem>>
    %208 = vector.broadcast %207 : f32 to vector<2x128xf32>
    %209 = arith.addf %206, %208 : vector<2x128xf32>
    %cst_114 = arith.constant 0.000000e+00 : f32
    %210 = vector.broadcast %cst_114 : f32 to vector<2x128xf32>
    %211 = arith.maximumf %209, %210 : vector<2x128xf32>
    %c10_115 = arith.constant 10 : index
    %c0_116 = arith.constant 0 : index
    %c0_117 = arith.constant 0 : index
    %212 = vector.load %arg4[%c10_115, %c0_116, %c0_117] : memref<15x2x128xf32, #tpu.memory_space<vmem>>, vector<1x2x128xf32>
    %213 = vector.shape_cast %212 : vector<1x2x128xf32> to vector<2x128xf32>
    %214 = vector.shape_cast %211 : vector<2x128xf32> to vector<1x2x128xf32>
    tpu.vector_store %arg4[%c10_115, %c0_116, %c0_117], %214 {strides = array<i32>} : memref<15x2x128xf32, #tpu.memory_space<vmem>>, vector<1x2x128xf32>,
    %c11 = arith.constant 11 : index
    %c0_118 = arith.constant 0 : index
    %215 = memref.load %arg1[%c11, %c0_118] : memref<15x3xf32, #tpu.memory_space<smem>>
    %216 = vector.broadcast %215 : f32 to vector<2x128xf32>
    %217 = arith.mulf %216, %1 : vector<2x128xf32>
    %c11_119 = arith.constant 11 : index
    %c1_120 = arith.constant 1 : index
    %218 = memref.load %arg1[%c11_119, %c1_120] : memref<15x3xf32, #tpu.memory_space<smem>>
    %219 = vector.broadcast %218 : f32 to vector<2x128xf32>
    %220 = arith.mulf %219, %3 : vector<2x128xf32>
    %221 = arith.addf %217, %220 : vector<2x128xf32>
    %c11_121 = arith.constant 11 : index
    %c2_122 = arith.constant 2 : index
    %222 = memref.load %arg1[%c11_121, %c2_122] : memref<15x3xf32, #tpu.memory_space<smem>>
    %223 = vector.broadcast %222 : f32 to vector<2x128xf32>
    %224 = arith.mulf %223, %5 : vector<2x128xf32>
    %225 = arith.addf %221, %224 : vector<2x128xf32>
    %c11_123 = arith.constant 11 : index
    %226 = memref.load %arg2[%c11_123] : memref<15xf32, #tpu.memory_space<smem>>
    %227 = vector.broadcast %226 : f32 to vector<2x128xf32>
    %228 = arith.addf %225, %227 : vector<2x128xf32>
    %cst_124 = arith.constant 0.000000e+00 : f32
    %229 = vector.broadcast %cst_124 : f32 to vector<2x128xf32>
    %230 = arith.maximumf %228, %229 : vector<2x128xf32>
    %c11_125 = arith.constant 11 : index
    %c0_126 = arith.constant 0 : index
    %c0_127 = arith.constant 0 : index
    %231 = vector.load %arg4[%c11_125, %c0_126, %c0_127] : memref<15x2x128xf32, #tpu.memory_space<vmem>>, vector<1x2x128xf32>
    %232 = vector.shape_cast %231 : vector<1x2x128xf32> to vector<2x128xf32>
    %233 = vector.shape_cast %230 : vector<2x128xf32> to vector<1x2x128xf32>
    tpu.vector_store %arg4[%c11_125, %c0_126, %c0_127], %233 {strides = array<i32>} : memref<15x2x128xf32, #tpu.memory_space<vmem>>, vector<1x2x128xf32>,
    %c12 = arith.constant 12 : index
    %c0_128 = arith.constant 0 : index
    %234 = memref.load %arg1[%c12, %c0_128] : memref<15x3xf32, #tpu.memory_space<smem>>
    %235 = vector.broadcast %234 : f32 to vector<2x128xf32>
    %236 = arith.mulf %235, %1 : vector<2x128xf32>
    %c12_129 = arith.constant 12 : index
    %c1_130 = arith.constant 1 : index
    %237 = memref.load %arg1[%c12_129, %c1_130] : memref<15x3xf32, #tpu.memory_space<smem>>
    %238 = vector.broadcast %237 : f32 to vector<2x128xf32>
    %239 = arith.mulf %238, %3 : vector<2x128xf32>
    %240 = arith.addf %236, %239 : vector<2x128xf32>
    %c12_131 = arith.constant 12 : index
    %c2_132 = arith.constant 2 : index
    %241 = memref.load %arg1[%c12_131, %c2_132] : memref<15x3xf32, #tpu.memory_space<smem>>
    %242 = vector.broadcast %241 : f32 to vector<2x128xf32>
    %243 = arith.mulf %242, %5 : vector<2x128xf32>
    %244 = arith.addf %240, %243 : vector<2x128xf32>
    %c12_133 = arith.constant 12 : index
    %245 = memref.load %arg2[%c12_133] : memref<15xf32, #tpu.memory_space<smem>>
    %246 = vector.broadcast %245 : f32 to vector<2x128xf32>
    %247 = arith.addf %244, %246 : vector<2x128xf32>
    %cst_134 = arith.constant 0.000000e+00 : f32
    %248 = vector.broadcast %cst_134 : f32 to vector<2x128xf32>
    %249 = arith.maximumf %247, %248 : vector<2x128xf32>
    %c12_135 = arith.constant 12 : index
    %c0_136 = arith.constant 0 : index
    %c0_137 = arith.constant 0 : index
    %250 = vector.load %arg4[%c12_135, %c0_136, %c0_137] : memref<15x2x128xf32, #tpu.memory_space<vmem>>, vector<1x2x128xf32>
    %251 = vector.shape_cast %250 : vector<1x2x128xf32> to vector<2x128xf32>
    %252 = vector.shape_cast %249 : vector<2x128xf32> to vector<1x2x128xf32>
    tpu.vector_store %arg4[%c12_135, %c0_136, %c0_137], %252 {strides = array<i32>} : memref<15x2x128xf32, #tpu.memory_space<vmem>>, vector<1x2x128xf32>,
    %c13 = arith.constant 13 : index
    %c0_138 = arith.constant 0 : index
    %253 = memref.load %arg1[%c13, %c0_138] : memref<15x3xf32, #tpu.memory_space<smem>>
    %254 = vector.broadcast %253 : f32 to vector<2x128xf32>
    %255 = arith.mulf %254, %1 : vector<2x128xf32>
    %c13_139 = arith.constant 13 : index
    %c1_140 = arith.constant 1 : index
    %256 = memref.load %arg1[%c13_139, %c1_140] : memref<15x3xf32, #tpu.memory_space<smem>>
    %257 = vector.broadcast %256 : f32 to vector<2x128xf32>
    %258 = arith.mulf %257, %3 : vector<2x128xf32>
    %259 = arith.addf %255, %258 : vector<2x128xf32>
    %c13_141 = arith.constant 13 : index
    %c2_142 = arith.constant 2 : index
    %260 = memref.load %arg1[%c13_141, %c2_142] : memref<15x3xf32, #tpu.memory_space<smem>>
    %261 = vector.broadcast %260 : f32 to vector<2x128xf32>
    %262 = arith.mulf %261, %5 : vector<2x128xf32>
    %263 = arith.addf %259, %262 : vector<2x128xf32>
    %c13_143 = arith.constant 13 : index
    %264 = memref.load %arg2[%c13_143] : memref<15xf32, #tpu.memory_space<smem>>
    %265 = vector.broadcast %264 : f32 to vector<2x128xf32>
    %266 = arith.addf %263, %265 : vector<2x128xf32>
    %cst_144 = arith.constant 0.000000e+00 : f32
    %267 = vector.broadcast %cst_144 : f32 to vector<2x128xf32>
    %268 = arith.maximumf %266, %267 : vector<2x128xf32>
    %c13_145 = arith.constant 13 : index
    %c0_146 = arith.constant 0 : index
    %c0_147 = arith.constant 0 : index
    %269 = vector.load %arg4[%c13_145, %c0_146, %c0_147] : memref<15x2x128xf32, #tpu.memory_space<vmem>>, vector<1x2x128xf32>
    %270 = vector.shape_cast %269 : vector<1x2x128xf32> to vector<2x128xf32>
    %271 = vector.shape_cast %268 : vector<2x128xf32> to vector<1x2x128xf32>
    tpu.vector_store %arg4[%c13_145, %c0_146, %c0_147], %271 {strides = array<i32>} : memref<15x2x128xf32, #tpu.memory_space<vmem>>, vector<1x2x128xf32>,
    %c14 = arith.constant 14 : index
    %c0_148 = arith.constant 0 : index
    %272 = memref.load %arg1[%c14, %c0_148] : memref<15x3xf32, #tpu.memory_space<smem>>
    %273 = vector.broadcast %272 : f32 to vector<2x128xf32>
    %274 = arith.mulf %273, %1 : vector<2x128xf32>
    %c14_149 = arith.constant 14 : index
    %c1_150 = arith.constant 1 : index
    %275 = memref.load %arg1[%c14_149, %c1_150] : memref<15x3xf32, #tpu.memory_space<smem>>
    %276 = vector.broadcast %275 : f32 to vector<2x128xf32>
    %277 = arith.mulf %276, %3 : vector<2x128xf32>
    %278 = arith.addf %274, %277 : vector<2x128xf32>
    %c14_151 = arith.constant 14 : index
    %c2_152 = arith.constant 2 : index
    %279 = memref.load %arg1[%c14_151, %c2_152] : memref<15x3xf32, #tpu.memory_space<smem>>
    %280 = vector.broadcast %279 : f32 to vector<2x128xf32>
    %281 = arith.mulf %280, %5 : vector<2x128xf32>
    %282 = arith.addf %278, %281 : vector<2x128xf32>
    %c14_153 = arith.constant 14 : index
    %283 = memref.load %arg2[%c14_153] : memref<15xf32, #tpu.memory_space<smem>>
    %284 = vector.broadcast %283 : f32 to vector<2x128xf32>
    %285 = arith.addf %282, %284 : vector<2x128xf32>
    %cst_154 = arith.constant 0.000000e+00 : f32
    %286 = vector.broadcast %cst_154 : f32 to vector<2x128xf32>
    %287 = arith.maximumf %285, %286 : vector<2x128xf32>
    %c14_155 = arith.constant 14 : index
    %c0_156 = arith.constant 0 : index
    %c0_157 = arith.constant 0 : index
    %288 = vector.load %arg4[%c14_155, %c0_156, %c0_157] : memref<15x2x128xf32, #tpu.memory_space<vmem>>, vector<1x2x128xf32>
    %289 = vector.shape_cast %288 : vector<1x2x128xf32> to vector<2x128xf32>
    %290 = vector.shape_cast %287 : vector<2x128xf32> to vector<1x2x128xf32>
    tpu.vector_store %arg4[%c14_155, %c0_156, %c0_157], %290 {strides = array<i32>} : memref<15x2x128xf32, #tpu.memory_space<vmem>>, vector<1x2x128xf32>,
    return
  }
  func.func @transform_0(%arg0: i32) -> (i32, i32) {
    %c0_i32 = arith.constant 0 : i32
    %c0_i32_0 = arith.constant 0 : i32
    %c0_i32_1 = arith.constant 0 : i32
    return %c0_i32, %c0_i32_0 : i32, i32
  }
  func.func @transform_1(%arg0: i32) -> i32 {
    %c0_i32 = arith.constant 0 : i32
    %c0_i32_0 = arith.constant 0 : i32
    return %c0_i32 : i32
  }
  func.func @transform_2(%arg0: i32) -> (i32, i32, i32) {
    %c0_i32 = arith.constant 0 : i32
    %c0_i32_0 = arith.constant 0 : i32
    %c0_i32_1 = arith.constant 0 : i32
    return %c0_i32, %c0_i32_0, %arg0 : i32, i32, i32
  }
  func.func @transform_3(%arg0: i32) -> (i32, i32, i32) {
    %c0_i32 = arith.constant 0 : i32
    %c0_i32_0 = arith.constant 0 : i32
    %c0_i32_1 = arith.constant 0 : i32
    return %c0_i32, %c0_i32_0, %arg0 : i32, i32, i32
  }
}

</mosaic_0001>

<bundles_post_ra>
// kernel: model_forward.1
= control target key start
LH: loop header
LB: loop body
LE: loop exit
PB: predicated region body
PF: predicated region fallthrough
CT: control target
= control target key end

     0   :  { %8 = vsyncpa [#allocation3], 0  ;;  %s1254_s0 = inlined_call_operand.vmem [shape: f32[15,3], index: 0, kind: input, shape index: {}]   ;;  %s1255_s1 = inlined_call_operand.vmem [shape: f32[15], index: 1, kind: input, shape index: {}]   ;;  %s1256_s2 = inlined_call_operand.vmem [shape: f32[3,2,256], index: 2, kind: input, shape index: {}]   ;;  %s1257_s3 = inlined_call_operand.vmem [shape: f32[15,2,256], index: 3, kind: output, shape index: {}]  }
   0x1   :  { %9 = vsyncpa [#allocation5], 0  ;;  %s899_s12 = smov 0   ;;  %s901_s13 = smov 0  }
   0x2   :  { %s903_s14 = smov 0  }
   0x3 LB: > { %s915_s15 = sadd.s32 4294967295, %s873_s14   ;;  %s918_s16 = sadd.s32 1, %s873_s14   ;;  %s873_s14 = sphi %s903_s14, %s1273_s14   ;;  %s869_s13 = sphi %s901_s13, %s1272_s13   ;;  %s865_s12 = sphi %s899_s12, %s1271_s12  }
   0x4   : > { %s61_s17 = ssub.s32 %s873_s14, %s918_s16  ;;  %s64_s18 = sadd.s32 1, %s869_s13 }
   0x5   : > { %p62_p0 = scmp.eq.s32.totalorder %s61_s17, 0  ;;  %p71_p1 = scmp.ne.s32.totalorder %s869_s13, %s865_s12 }
   0x6   : > { %p72_p2 = scmp.eq.s32.totalorder %s873_s14, 0  ;;  %p101_p3 = scmp.eq.s32.totalorder %s915_s15, 1 }
   0x7   : > { %s928_s19 = scalar_select %p62_p0, %s869_s13, %s64_s18  }
   0x8   : > { %p930_p4 = por %p72_p2, %p71_p1  ;;  %p934_p5 = por %p101_p3, %p71_p1 }
   0x9   : > { %p678_p6 = scmp.ge.s32.totalorder %s873_s14, 1  ;;  %p114_p7 = scmp.lt.s32.totalorder %s873_s14, 3 }
   0xa   : > { %s1260_s20 = scalar_select %p930_p4, 1, 0 }
   0xb   : > { %s1261_s21 = scalar_select %p934_p5, 1, 0 }
   0xc   : > { %p1258_p8 = scmp.eq.s32.totalorder %s915_s15, 0  ;;  %p941_p9 = pnand %p678_p6, %p114_p7 }
   0xd   : > { %s126_s25 = sshll.u32 %s1254_s0, 4  ;;  %s140_s28 = sshll.u32 %s1255_s1, 4  ;;  %s127_s25 = int_to_ptr.vmem [resolvable:$true] %s126_s25  ;;  %s141_s28 = int_to_ptr.vmem [resolvable:$true] %s140_s28 }
   0xe   : > { %s1262_s22 = scalar_select %p941_p9, 1, 0 }
   0xf   : > { %p774_p10 = pneg %p941_p9  ;;  %s813_s30 = scalar_lea.vmem %s127_s25, 256 }
  0x10   : > { %p814_p12 = scmp.ne.s32.totalorder %s127_s25, %s813_s30  ;;  %p821_p2 = scmp.lt.s32.totalorder %s127_s25, %s127_s25 }
  0x11   : > { %p955_p11 = pnand %p1258_p8, %p774_p10  ;;  %p822_p3 = scmp.lt.s32.totalorder %s813_s30, %s813_s30 }
  0x13   : > { %p815_p13 = pneg %p955_p11  ;;  %p823_p6 = por %p822_p3, %p821_p2 }
  0x15   : > { %p816_p0 = pnand %p815_p13, %p814_p12 }
  0x17   : > { %p817_p1 = pneg %p816_p0 }
  0x19   : > { %p824_p7 = pnand %p823_p6, %p817_p1 }
  0x1b   : > { %827 = shalt.err (!%p824_p7)
}
  0x1c   : > { %s875_s4 = smov [#allocation2]   ;;  %s876_s5 = smov 128  }
  0x1d   : > { %s877_s6 = smov 8   ;;  %s828_s7 = scalar_lea.vmem %s141_s28, 16 }
  0x1e   : > { %777 = dma.vmem_to_smem (!%p955_p11), %s127_s25, 256, %s875_s4, [#allocation3], %s876_s5, %s876_s5, %s877_s6  }
  0x1f   : > { %p829_p10 = scmp.ne.s32.totalorder %s141_s28, %s828_s7  ;;  %p836_p12 = scmp.lt.s32.totalorder %s141_s28, %s141_s28 }
  0x20   : > { %p837_p0 = scmp.lt.s32.totalorder %s828_s7, %s828_s7 }
  0x21   : > { %p831_p8 = pnand %p829_p10, %p815_p13 }
  0x22   : > { %p838_p9 = por %p837_p0, %p836_p12 }
  0x23   : > { %p832_p5 = pneg %p831_p8 }
  0x25   : > { %p839_p4 = pnand %p838_p9, %p832_p5 }
  0x27   : > { %842 = shalt.err (!%p839_p4)
}
  0x28   : > { %s878_s8 = smov [#allocation4]   ;;  %p681_p1 = scmp.ge.s32.totalorder %s873_s14, 2 }
  0x29   : > { %780 = dma.vmem_to_smem (!%p955_p11), %s141_s28, 16, %s878_s8, [#allocation5]  }
  0x2a   : > { %147 = sbr.rel (%p681_p1) target bundleno = 56 (0x38), region = 24  ;;  %p1264_p2 = scmp.ne.s32.totalorder (!%p681_p1), %s1260_s20, 0 }
  0x31   : > { %150 = sbr.rel (!%p1264_p2) target bundleno = 56 (0x38), region = 28  ;;  %s152_s9 = sand.u32 (%p1264_p2), 1, %s869_s13  }
  0x32   : > { %s682_s10 = sshll.u32 (%p1264_p2), %s873_s14, 1  ;;  %s763_s11 = smul.u32 (%p1264_p2), 6, %s152_s9 }
  0x33   : > { %s156_s23 = scalar_lea.vmem (%p1264_p2), %s1256_s2, %s682_s10 }
  0x34   : > { %v172_v0 = vld [vmem:[%s156_s23] sm:$0x3] (%p1264_p2)  ;;  %v174_v1 = vld [vmem:[%s156_s23 + $0x4] sm:$0x3] (%p1264_p2)  ;;  %v176_v2 = vld [vmem:[%s156_s23 + $0x8] sm:$0x3] (%p1264_p2) }
  0x35   : > { %s154_s24 = scalar_lea.vmem (%p1264_p2), [#allocation6], %s763_s11 }
  0x36   : > { %173 = vst [vmem:[%s154_s24] sm:$0x3] (%p1264_p2), %v172_v0  ;;  %175 = vst [vmem:[%s154_s24 + $0x2] sm:$0x3] (%p1264_p2), %v174_v1 }
  0x37   : > { %177 = vst [vmem:[%s154_s24 + $0x4] sm:$0x3] (%p1264_p2), %v176_v2 }
  0x38 PF: > { %p1265_p4 = scmp.ne.s32.totalorder %s1262_s22, 0 }
  0x39   : > { %p1266_p5 = scmp.eq.s32.totalorder (!%p1265_p4), %s915_s15, 0 }
  0x3a   : > { %201 = sbr.rel (%p1265_p4) target bundleno = 138 (0x8a), region = 62 }
  0x41   : > { %856 = dma.done.wait (%p1266_p5), [#allocation3], 256   ;;  %p1267_p8 = pmov %p1266_p5 }
  0x42   : > { %p1268_p9 = pmov %p1266_p5 }
  0x43   : > { %858 = vsyncadd (%p1267_p8), [#allocation3], 4294967040 }
  0x44   : > { %860 = dma.done.wait (%p1268_p9), [#allocation5], 16   ;;  %p1269_p11 = pmov %p1266_p5 }
  0x45   : > { %s212_s14 = sand.u32 1, %s865_s12  }
  0x46   : > { %862 = vsyncadd (%p1269_p11), [#allocation5], 4294967280  ;;  %s764_s20 = smul.u32 6, %s212_s14 }
  0x48   : > { %s214_s25 = scalar_lea.vmem [#allocation6], %s764_s20 }
  0x49   : > { %218 = sfence }
  0x4a   : > { %s240_s26 = sld [smem:[#allocation2]]  ;;  %s688_s22 = sld [smem:[#allocation2 + $0x1]]  ;;  %v994_v3 = vld [vmem:[%s214_s25] sm:$0x3]  ;;  %v996_v4 = vld [vmem:[%s214_s25 + $0x2] sm:$0x3] }
  0x4b   : > { %s990_s27 = smul.u32 30, %s212_s14  ;;  %s689_s28 = sld [smem:[#allocation2 + $0x2]]  ;;  %v1002_v5 = vld [vmem:[%s214_s25 + $0x4] sm:$0x3] }
  0x4c   : > { %s992_s29 = sld [smem:[#allocation4]]  ;;  %s691_s4 = sld [smem:[#allocation2 + $0x81]] }
  0x4d   : > { %s690_s30 = sld [smem:[#allocation2 + $0x80]]  ;;  %s692_s5 = sld [smem:[#allocation2 + $0x82]] }
  0x4e   : > { %s998_s6 = sld [smem:[#allocation4 + $0x1]]  ;;  %s1000_s12 = sld [smem:[#allocation2 + $0x100]] }
  0x4f   : > { %s1004_s7 = sld [smem:[#allocation2 + $0x101]]  ;;  %s1006_s8 = sld [smem:[#allocation2 + $0x102]] }
  0x50   : > { %v241_v6 = vstv %s240_s26  ;;  %v244_v7 = vstv %s688_s22  ;;  %s1008_s9 = sld [smem:[#allocation4 + $0x2]]  ;;  %s1010_s10 = sld [smem:[#allocation2 + $0x180]] }
  0x51   : > { %v242_v8 = vmul.f32 %v241_v6, %v994_v3  ;;  %v245_v9 = vmul.f32 %v996_v4, %v244_v7  ;;  %v248_v10 = vstv %s689_s28  ;;  %s1014_s11 = sld [smem:[#allocation2 + $0x181]]  ;;  %s1016_s17 = sld [smem:[#allocation2 + $0x182]] }
  0x52   : > { %v249_v11 = vmul.f32 %v1002_v5, %v248_v10  ;;  %v252_v12 = vstv %s992_s29  ;;  %s1020_s18 = sld [smem:[#allocation4 + $0x3]]  ;;  %s1022_s23 = sld [smem:[#allocation2 + $0x200]]  ;;  %v260_v16 = vstv %s691_s4 }
  0x53   : > { %v257_v13 = vstv %s690_s30  ;;  %v246_v14 = vadd.f32 %v245_v9, %v242_v8  ;;  %v264_v17 = vstv %s692_s5  ;;  %s1025_s24 = sld [smem:[#allocation2 + $0x201]]  ;;  %s1027_s14 = sld [smem:[#allocation2 + $0x202]]  ;;  %v261_v18 = vmul.f32 %v996_v4, %v260_v16 }
  0x54   : > { %v258_v15 = vmul.f32 %v257_v13, %v994_v3  ;;  %v265_v19 = vmul.f32 %v1002_v5, %v264_v17  ;;  %v268_v20 = vstv %s998_s6  ;;  %v274_v21 = vstv %s1000_s12  ;;  %s1033_s20 = sld [smem:[#allocation4 + $0x4]]  ;;  %s1035_s25 = sld [smem:[#allocation2 + $0x280]] }
  0x55   : > { %v250_v22 = vadd.f32 %v249_v11, %v246_v14  ;;  %v275_v23 = vmul.f32 %v274_v21, %v994_v3  ;;  %v277_v24 = vstv %s1004_s7  ;;  %v281_v25 = vstv %s1006_s8  ;;  %s1040_s26 = sld [smem:[#allocation2 + $0x281]]  ;;  %s1042_s22 = sld [smem:[#allocation2 + $0x282]] }
  0x56   : > { %v262_v26 = vadd.f32 %v261_v18, %v258_v15  ;;  %v278_v27 = vmul.f32 %v996_v4, %v277_v24  ;;  %v282_v28 = vmul.f32 %v1002_v5, %v281_v25  ;;  %v285_v29 = vstv %s1008_s9  ;;  %s1047_s28 = sld [smem:[#allocation4 + $0x5]]  ;;  %s1052_s29 = sld [smem:[#allocation2 + $0x300]] }
  0x57   : > { %v253_v30 = vadd.f32 %v252_v12, %v250_v22  ;;  %v291_v31 = vstv %s1010_s10  ;;  %v294_v32 = vstv %s1014_s11  ;;  %v298_v33 = vstv %s1016_s17  ;;  %s1054_s30 = sld [smem:[#allocation2 + $0x301]]  ;;  %s1058_s4 = sld [smem:[#allocation2 + $0x302]] }
  0x58   : > { %v266_v34 = vadd.f32 %v265_v19, %v262_v26  ;;  %v279_v35 = vadd.f32 %v278_v27, %v275_v23  ;;  %v292_v36 = vmul.f32 %v291_v31, %v994_v3  ;;  %v295_v37 = vmul.f32 %v996_v4, %v294_v32  ;;  %s1063_s5 = sld [smem:[#allocation4 + $0x6]]  ;;  %s1065_s6 = sld [smem:[#allocation2 + $0x380]] }
  0x59   : > { %v254_v38 = vmax.f32 %v253_v30, 0.0  ;;  %v299_v39 = vmul.f32 %v1002_v5, %v298_v33  ;;  %v302_v40 = vstv %s1020_s18  ;;  %v308_v41 = vstv %s1022_s23  ;;  %s1068_s12 = sld [smem:[#allocation2 + $0x381]]  ;;  %s1071_s7 = scalar_lea.vmem [#allocation7], %s990_s27 }
  0x5a   : > { %v269_v42 = vadd.f32 %v268_v20, %v266_v34  ;;  %v283_v43 = vadd.f32 %v282_v28, %v279_v35  ;;  %v296_v44 = vadd.f32 %v295_v37, %v292_v36  ;;  %v309_v45 = vmul.f32 %v308_v41, %v994_v3  ;;  %s1078_s8 = sld [smem:[#allocation2 + $0x382]]  ;;  %s1080_s9 = sld [smem:[#allocation4 + $0x7]] }
  0x5b   : > { %255 = vst [vmem:[%s1071_s7] sm:$0x3] %v254_v38  ;;  %v311_v46 = vstv %s1025_s24  ;;  %v315_v47 = vstv %s1027_s14  ;;  %v319_v48 = vstv %s1033_s20  ;;  %s1083_s27 = sld [smem:[#allocation2 + $0x400]]  ;;  %s1089_s10 = sld [smem:[#allocation2 + $0x401]] }
  0x5c   : > { %v325_v49 = vstv %s1035_s25  ;;  %v270_v50 = vmax.f32 %v269_v42, 0.0  ;;  %v286_v51 = vadd.f32 %v285_v29, %v283_v43  ;;  %v300_v52 = vadd.f32 %v299_v39, %v296_v44  ;;  %s1091_s11 = sld [smem:[#allocation2 + $0x402]]  ;;  %s1099_s17 = sld [smem:[#allocation4 + $0x8]] }
  0x5d   : > { %v312_v53 = vmul.f32 %v996_v4, %v311_v46  ;;  %v316_v54 = vmul.f32 %v1002_v5, %v315_v47  ;;  %v326_v55 = vmul.f32 %v325_v49, %v994_v3  ;;  %v328_v56 = vstv %s1040_s26  ;;  %s1101_s18 = sld [smem:[#allocation2 + $0x480]]  ;;  %s1105_s23 = sld [smem:[#allocation2 + $0x481]] }
  0x5e   : > { %v332_v57 = vstv %s1042_s22  ;;  %694 = vst [vmem:[%s1071_s7 + $0x2] sm:$0x3] %v270_v50  ;;  %v287_v58 = vmax.f32 %v286_v51, 0.0  ;;  %v303_v59 = vadd.f32 %v302_v40, %v300_v52  ;;  %v329_v61 = vmul.f32 %v996_v4, %v328_v56  ;;  %s1111_s24 = sld [smem:[#allocation2 + $0x482]]  ;;  %s1113_s14 = sld [smem:[#allocation4 + $0x9]] }
  0x5f   : > { %v313_v60 = vadd.f32 %v312_v53, %v309_v45  ;;  %v333_v62 = vmul.f32 %v1002_v5, %v332_v57  ;;  %v336_v63 = vstv %s1047_s28  ;;  %v342_v0 = vstv %s1052_s29  ;;  %s1118_s20 = sld [smem:[#allocation2 + $0x500]]  ;;  %s1123_s25 = sld [smem:[#allocation2 + $0x501]] }
  0x60   : > { %v345_v1 = vstv %s1054_s30  ;;  %699 = vst [vmem:[%s1071_s7 + $0x4] sm:$0x3] %v287_v58  ;;  %v304_v2 = vmax.f32 %v303_v59, 0.0  ;;  %v330_v7 = vadd.f32 %v329_v61, %v326_v55  ;;  %v343_v8 = vmul.f32 %v342_v0, %v994_v3  ;;  %s1125_s26 = sld [smem:[#allocation2 + $0x502]]  ;;  %s1132_s22 = sld [smem:[#allocation2 + $0x580]] }
  0x61   : > { %v317_v6 = vadd.f32 %v316_v54, %v313_v60  ;;  %v346_v9 = vmul.f32 %v996_v4, %v345_v1  ;;  %v349_v10 = vstv %s1058_s4  ;;  %v353_v11 = vstv %s1063_s5  ;;  %s1134_s28 = sld [smem:[#allocation2 + $0x581]]  ;;  %s1139_s29 = sld [smem:[#allocation4 + $0xa]] }
  0x62   : > { %v359_v12 = vstv %s1065_s6  ;;  %704 = vst [vmem:[%s1071_s7 + $0x6] sm:$0x3] %v304_v2  ;;  %v334_v14 = vadd.f32 %v333_v62, %v330_v7  ;;  %v350_v15 = vmul.f32 %v1002_v5, %v349_v10  ;;  %v362_v18 = vstv %s1068_s12  ;;  %s1144_s30 = sld [smem:[#allocation2 + $0x582]]  ;;  %s1146_s4 = sld [smem:[#allocation2 + $0x600]] }
  0x63   : > { %v320_v13 = vadd.f32 %v319_v48, %v317_v6  ;;  %v360_v16 = vmul.f32 %v359_v12, %v994_v3  ;;  %v347_v17 = vadd.f32 %v346_v9, %v343_v8  ;;  %v366_v19 = vstv %s1078_s8  ;;  %s1151_s5 = sld [smem:[#allocation4 + $0xb]]  ;;  %s1156_s6 = sld [smem:[#allocation2 + $0x601]] }
  0x64   : > { %v370_v20 = vstv %s1080_s9  ;;  %v337_v22 = vadd.f32 %v336_v63, %v334_v14  ;;  %v363_v23 = vmul.f32 %v996_v4, %v362_v18  ;;  %v367_v24 = vmul.f32 %v1002_v5, %v366_v19  ;;  %s1158_s12 = sld [smem:[#allocation2 + $0x602]]  ;;  %s1162_s8 = sld [smem:[#allocation4 + $0xc]] }
  0x65   : > { %v321_v21 = vmax.f32 %v320_v13, 0.0  ;;  %v351_v25 = vadd.f32 %v350_v15, %v347_v17  ;;  %v376_v26 = vstv %s1083_s27  ;;  %v379_v27 = vstv %s1089_s10  ;;  %s1164_s9 = sld [smem:[#allocation2 + $0x680]]  ;;  %s1170_s27 = sld [smem:[#allocation2 + $0x681]] }
  0x66   : > { %v383_v28 = vstv %s1091_s11  ;;  %v338_v29 = vmax.f32 %v337_v22, 0.0  ;;  %v364_v30 = vadd.f32 %v363_v23, %v360_v16  ;;  %v377_v31 = vmul.f32 %v376_v26, %v994_v3  ;;  %s1172_s10 = sld [smem:[#allocation2 + $0x682]]  ;;  %s1178_s11 = sld [smem:[#allocation2 + $0x700]] }
  0x67   : > { %709 = vst [vmem:[%s1071_s7 + $0x8] sm:$0x3] %v321_v21  ;;  %v380_v32 = vmul.f32 %v996_v4, %v379_v27  ;;  %v354_v33 = vadd.f32 %v353_v11, %v351_v25  ;;  %v384_v34 = vmul.f32 %v1002_v5, %v383_v28  ;;  %v387_v35 = vstv %s1099_s17  ;;  %s1180_s17 = sld [smem:[#allocation2 + $0x701]]  ;;  %p1270_p13 = scmp.ne.s32.totalorder %s1261_s21, 0 }
  0x68   : > { %v393_v36 = vstv %s1101_s18  ;;  %714 = vst [vmem:[%s1071_s7 + $0xa] sm:$0x3] %v338_v29  ;;  %v368_v37 = vadd.f32 %v367_v24, %v364_v30  ;;  %v396_v40 = vstv %s1105_s23  ;;  %v400_v43 = vstv %s1111_s24  ;;  %s1188_s18 = sld [smem:[#allocation2 + $0x702]]  ;;  %s1193_s23 = sld [smem:[#allocation4 + $0xd]] }
  0x69   : > { %v381_v38 = vadd.f32 %v380_v32, %v377_v31  ;;  %v394_v39 = vmul.f32 %v393_v36, %v994_v3  ;;  %v355_v41 = vmax.f32 %v354_v33, 0.0  ;;  %v397_v42 = vmul.f32 %v996_v4, %v396_v40  ;;  %s1198_s24 = sld [smem:[#allocation4 + $0xe]] }
  0x6a   : > { %v404_v44 = vstv %s1113_s14  ;;  %v371_v45 = vadd.f32 %v370_v20, %v368_v37  ;;  %v401_v47 = vmul.f32 %v1002_v5, %v400_v43  ;;  %v410_v48 = vstv %s1118_s20  ;;  %s760_s14 = sshll.u32 (%p1270_p13), %s915_s15, 1 }
  0x6b   : > { %v385_v46 = vadd.f32 %v384_v34, %v381_v38  ;;  %719 = vst [vmem:[%s1071_s7 + $0xc] sm:$0x3] %v355_v41  ;;  %v398_v49 = vadd.f32 %v397_v42, %v394_v39  ;;  %v411_v50 = vmul.f32 %v410_v48, %v994_v3  ;;  %v413_v51 = vstv %s1123_s25  ;;  %v522_v48 = vld [vmem:[%s1071_s7 + $0x4] sm:$0x3] (%p1270_p13) }
  0x6c   : > { %v417_v52 = vstv %s1125_s26  ;;  %v372_v53 = vmax.f32 %v371_v45, 0.0  ;;  %v414_v55 = vmul.f32 %v996_v4, %v413_v51  ;;  %v427_v58 = vstv %s1132_s22  ;;  %s502_s26 = scalar_lea.vmem (%p1270_p13), %s1257_s3, %s760_s14 }
  0x6d   : > { %v388_v54 = vadd.f32 %v387_v35, %v385_v46  ;;  %v418_v56 = vmul.f32 %v1002_v5, %v417_v52  ;;  %v402_v57 = vadd.f32 %v401_v47, %v398_v49  ;;  %v430_v59 = vstv %s1134_s28  ;;  %v524_v49 = vld [vmem:[%s1071_s7 + $0x6] sm:$0x3] (%p1270_p13)  ;;  %523 = vst [vmem:[%s502_s26 + $0x8] sm:$0x3] (%p1270_p13), %v522_v48 }
  0x6e   : > { %724 = vst [vmem:[%s1071_s7 + $0xe] sm:$0x3] %v372_v53  ;;  %v415_v61 = vadd.f32 %v414_v55, %v411_v50  ;;  %v428_v62 = vmul.f32 %v427_v58, %v994_v3  ;;  %v431_v63 = vmul.f32 %v996_v4, %v430_v59  ;;  %v421_v1 = vstv %s1139_s29  ;;  %v526_v50 = vld [vmem:[%s1071_s7 + $0x8] sm:$0x3] (%p1270_p13)  ;;  %525 = vst [vmem:[%s502_s26 + $0xc] sm:$0x3] (%p1270_p13), %v524_v49 }
  0x6f   : > { %v389_v60 = vmax.f32 %v388_v54, 0.0  ;;  %v405_v0 = vadd.f32 %v404_v44, %v402_v57  ;;  %v434_v2 = vstv %s1144_s30  ;;  %v444_v6 = vstv %s1146_s4  ;;  %527 = vst [vmem:[%s502_s26 + $0x10] sm:$0x3] (%p1270_p13), %v526_v50  ;;  %v528_v51 = vld [vmem:[%s1071_s7 + $0xa] sm:$0x3] (%p1270_p13) }
  0x70   : > { %v419_v7 = vadd.f32 %v418_v56, %v415_v61  ;;  %v432_v8 = vadd.f32 %v431_v63, %v428_v62  ;;  %v435_v9 = vmul.f32 %v1002_v5, %v434_v2  ;;  %v445_v10 = vmul.f32 %v444_v6, %v994_v3  ;;  %529 = vst [vmem:[%s502_s26 + $0x14] sm:$0x3] (%p1270_p13), %v528_v51 }
  0x71   : > { %729 = vst [vmem:[%s1071_s7 + $0x10] sm:$0x3] %v389_v60  ;;  %v406_v11 = vmax.f32 %v405_v0, 0.0  ;;  %v438_v12 = vstv %s1151_s5  ;;  %v447_v13 = vstv %s1156_s6  ;;  %v451_v14 = vstv %s1158_s12 }
  0x72   : > { %v422_v15 = vadd.f32 %v421_v1, %v419_v7  ;;  %v436_v16 = vadd.f32 %v435_v9, %v432_v8  ;;  %v448_v17 = vmul.f32 %v996_v4, %v447_v13  ;;  %v452_v18 = vmul.f32 %v1002_v5, %v451_v14  ;;  %v530_v52 = vld [vmem:[%s1071_s7 + $0xc] sm:$0x3] (%p1270_p13) }
  0x73   : > { %734 = vst [vmem:[%s1071_s7 + $0x12] sm:$0x3] %v406_v11  ;;  %v455_v19 = vstv %s1162_s8  ;;  %v461_v20 = vstv %s1164_s9  ;;  %v464_v21 = vstv %s1170_s27 }
  0x74   : > { %v468_v22 = vstv %s1172_s10  ;;  %v423_v23 = vmax.f32 %v422_v15, 0.0  ;;  %v439_v24 = vadd.f32 %v438_v12, %v436_v16  ;;  %v449_v25 = vadd.f32 %v448_v17, %v445_v10  ;;  %531 = vst [vmem:[%s502_s26 + $0x18] sm:$0x3] (%p1270_p13), %v530_v52 }
  0x75   : > { %v462_v26 = vmul.f32 %v461_v20, %v994_v3  ;;  %v465_v27 = vmul.f32 %v996_v4, %v464_v21  ;;  %v469_v28 = vmul.f32 %v1002_v5, %v468_v22  ;;  %v478_v29 = vstv %s1178_s11  ;;  %v532_v53 = vld [vmem:[%s1071_s7 + $0xe] sm:$0x3] (%p1270_p13) }
  0x76   : > { %v481_v30 = vstv %s1180_s17  ;;  %739 = vst [vmem:[%s1071_s7 + $0x14] sm:$0x3] %v423_v23  ;;  %v440_v31 = vmax.f32 %v439_v24, 0.0  ;;  %v453_v32 = vadd.f32 %v452_v18, %v449_v25  ;;  %v479_v33 = vmul.f32 %v478_v29, %v994_v3  ;;  %533 = vst [vmem:[%s502_s26 + $0x1c] sm:$0x3] (%p1270_p13), %v532_v53 }
  0x77   : > { %v482_v34 = vmul.f32 %v996_v4, %v481_v30  ;;  %v466_v35 = vadd.f32 %v465_v27, %v462_v26  ;;  %v485_v36 = vstv %s1188_s18  ;;  %v472_v38 = vstv %s1193_s23  ;;  %v518_v4 = vld [vmem:[%s1071_s7] sm:$0x3] (%p1270_p13) }
  0x78   : > { %744 = vst [vmem:[%s1071_s7 + $0x16] sm:$0x3] %v440_v31  ;;  %v456_v37 = vadd.f32 %v455_v19, %v453_v32  ;;  %v486_v40 = vmul.f32 %v1002_v5, %v485_v36  ;;  %v489_v42 = vstv %s1198_s24  ;;  %v520_v5 = vld [vmem:[%s1071_s7 + $0x2] sm:$0x3] (%p1270_p13)  ;;  %519 = vst [vmem:[%s502_s26] sm:$0x3] (%p1270_p13), %v518_v4 }
  0x79   : > { %v483_v39 = vadd.f32 %v482_v34, %v479_v33  ;;  %v470_v41 = vadd.f32 %v469_v28, %v466_v35  ;;  %521 = vst [vmem:[%s502_s26 + $0x4] sm:$0x3] (%p1270_p13), %v520_v5  ;;  %v534_v54 = vld [vmem:[%s1071_s7 + $0x10] sm:$0x3] (%p1270_p13) }
  0x7a   : > { %v457_v43 = vmax.f32 %v456_v37, 0.0  ;;  %v536_v55 = vld [vmem:[%s1071_s7 + $0x12] sm:$0x3] (%p1270_p13)  ;;  %535 = vst [vmem:[%s502_s26 + $0x20] sm:$0x3] (%p1270_p13), %v534_v54 }
  0x7b   : > { %v487_v44 = vadd.f32 %v486_v40, %v483_v39  ;;  %v473_v45 = vadd.f32 %v472_v38, %v470_v41  ;;  %500 = sbr.rel (!%p1270_p13) target bundleno = 138 (0x8a), region = 78  ;;  %537 = vst [vmem:[%s502_s26 + $0x24] sm:$0x3] (%p1270_p13), %v536_v55 }
  0x7c   : > { %749 = vst [vmem:[%s1071_s7 + $0x18] sm:$0x3] %v457_v43 }
  0x7d   : > { %v490_v46 = vadd.f32 %v489_v42, %v487_v44  ;;  %v474_v3 = vmax.f32 %v473_v45, 0.0  ;;  %v538_v56 = vld [vmem:[%s1071_s7 + $0x14] sm:$0x3] (%p1270_p13) }
  0x7e   : > { %539 = vst [vmem:[%s502_s26 + $0x28] sm:$0x3] (%p1270_p13), %v538_v56 }
  0x7f   : > { %v491_v47 = vmax.f32 %v490_v46, 0.0  ;;  %754 = vst [vmem:[%s1071_s7 + $0x1a] sm:$0x3] %v474_v3  ;;  %v540_v57 = vld [vmem:[%s1071_s7 + $0x16] sm:$0x3] (%p1270_p13) }
  0x80   : > { %541 = vst [vmem:[%s502_s26 + $0x2c] sm:$0x3] (%p1270_p13), %v540_v57 }
  0x81   : > { %759 = vst [vmem:[%s1071_s7 + $0x1c] sm:$0x3] %v491_v47 }
  0x83   : > { %v542_v58 = vld [vmem:[%s1071_s7 + $0x18] sm:$0x3] }
  0x84   : > { %543 = vst [vmem:[%s502_s26 + $0x30] sm:$0x3] %v542_v58 }
  0x86   : > { %v544_v59 = vld [vmem:[%s1071_s7 + $0x1a] sm:$0x3] }
  0x87   : > { %545 = vst [vmem:[%s502_s26 + $0x34] sm:$0x3] %v544_v59 }
  0x88   : > { %v546_v60 = vld [vmem:[%s1071_s7 + $0x1c] sm:$0x3] }
  0x89   : > { %547 = vst [vmem:[%s502_s26 + $0x38] sm:$0x3] %v546_v60 }
  0x8a PF: > { %p12_p3 = scmp.ge.s32.totalorder %s918_s16, 4   ;;  %s1271_s12 = smov %s869_s13 }
  0x8b   : > { %s1272_s13 = smov %s928_s19  ;;  %s1273_s14 = smov %s918_s16 }
  0x8c   :  { %14 = sbr.rel (!%p12_p3) target bundleno = 3 (0x3), region = 167 }
  0x93   :  { %610 = vsyncpa [#allocation3], 1 }
  0x94   :  { %612 = vsyncpa [#allocation3 + $0x1], 1 }
  0x95   :  { %613 = vsyncpa [#allocation5], 1 }

</bundles_post_ra>
